<compile_context>
chip_gen: v7x
topology: tpu7x:2x2x1
jax: 0.10.0
libtpu: 0.0.40
codegen_flags: <defaults>
</compile_context>

<pallas_src>
import jax
import jax.numpy as jnp
from jax.experimental import pallas as pl
from jax.experimental.pallas import tpu as pltpu

_F = 5                          # feature dim of the PyTorch weight
_LANES = 640                    # lcm(5, 128): lane-dense flattened width
_ROWS_PER_FLAT = _LANES // _F   # 128 logical rows per flattened row


def _round_up(a, b):
    return ((a + b - 1) // b) * b


def _chip_defaults():
    """(block_rows, vmem_limit_bytes, is_v5e) sized per TPU generation."""
    try:
        kind = jax.devices()[0].device_kind.lower()
    except Exception:
        kind = ""
    if "v7" in kind:
        # 4 buffers x 4096 x 640 x 4B ~= 42 MiB: fits 64 MiB physical VMEM
        # once the default 32 MiB scoped limit is raised.
        return 4096, 48 * 1024 * 1024, False
    if "v6" in kind:
        # ~21 MiB double-buffered in+out: under the 32 MiB default limit.
        return 2048, None, False
    if "v5e" in kind or "v5 lite" in kind or "v5litepod" in kind:
        # ~10.5 MiB: under v5e's 16 MiB default scoped-VMEM limit.
        return 1024, None, True
    return 1024, None, False


def _make_kernel(compute_dtype):
    def kernel(x_ref, w_ref, b_ref, o_ref):
        # x_ref: (bm, L) VMEM tile; w_ref: (1, L) broadcast row;
        # b_ref: (1, 1) SMEM f32 scalar.
        x = x_ref[...].astype(compute_dtype)
        w = w_ref[...].astype(compute_dtype)
        b = b_ref[0, 0].astype(compute_dtype)
        o_ref[...] = (x * w + b).astype(o_ref.dtype)
    return kernel


def _flat_affine(x_flat, w_tiled, b_smem, compute_dtype, block_rows,
                 vmem_limit, donate_input):
    """Lane-dense (M, 640) elementwise affine."""
    M = x_flat.shape[0]
    dtype = x_flat.dtype

    # Pick bm: big enough to amortize per-step overhead, small enough to keep
    # >= 2-4 grid steps so input/output DMAs overlap with compute.
    if M <= 8:
        bm = M
    else:
        bm = min(block_rows, _round_up(pl.cdiv(M, 4), 8))
    grid = (pl.cdiv(M, bm),)

    itemsize = jnp.dtype(dtype).itemsize
    return pl.pallas_call(
        _make_kernel(compute_dtype),
        out_shape=jax.ShapeDtypeStruct((M, _LANES), dtype),
        grid=grid,
        in_specs=[
            pl.BlockSpec((bm, _LANES), lambda i: (i, 0)),
            pl.BlockSpec((1, _LANES), lambda i: (0, 0)),
            pl.BlockSpec((1, 1), lambda i: (0, 0),
                         memory_space=pltpu.MemorySpace.SMEM),
        ],
        out_specs=pl.BlockSpec((bm, _LANES), lambda i: (i, 0)),
        # Only alias when the caller no longer needs x (avoids a defensive
        # copy on live, non-donated parameters).
        input_output_aliases=({0: 0} if donate_input else {}),
        compiler_params=pltpu.CompilerParams(
            dimension_semantics=("parallel",),
            vmem_limit_bytes=vmem_limit),
        cost_estimate=pl.CostEstimate(
            flops=2 * M * _LANES,
            transcendentals=0,
            bytes_accessed=2 * M * _LANES * itemsize),
    )(x_flat, w_tiled, b_smem)


def _tail_affine(x_tail, weight, b_smem, compute_dtype):
    """<=127-row remainder in the natural (tail, 5) layout (tiny)."""
    tail = x_tail.shape[0]
    dtype = x_tail.dtype
    return pl.pallas_call(
        _make_kernel(compute_dtype),
        out_shape=jax.ShapeDtypeStruct((tail, _F), dtype),
        grid=(1,),
        in_specs=[
            pl.BlockSpec((tail, _F), lambda i: (0, 0)),
            pl.BlockSpec((1, _F), lambda i: (0, 0)),
            pl.BlockSpec((1, 1), lambda i: (0, 0),
                         memory_space=pltpu.MemorySpace.SMEM),
        ],
        out_specs=pl.BlockSpec((tail, _F), lambda i: (0, 0)),
    )(x_tail, weight.reshape(1, _F).astype(dtype), b_smem)


def simple_model_forward(x, weight, bias, *, block_rows=None,
                         donate_input=False):
    """x: (N, 5), weight: (5,), bias: (1,)  ->  (N, 5) = x * weight + bias."""
    N, F = x.shape
    assert F == _F and weight.shape == (_F,) and bias.shape == (1,)
    dtype = x.dtype

    chip_rows, vmem_limit, is_v5e = _chip_defaults()
    if block_rows is None:
        block_rows = chip_rows
    # bf16 stays bf16 on v6e/v7x; f32 accumulate only where needed (v5e/f32).
    compute_dtype = (jnp.float32
                     if (dtype == jnp.float32 or is_v5e) else dtype)

    b_smem = bias.reshape(1, 1).astype(jnp.float32)

    # Split: bulk (multiple of 128 rows, lane-dense flat path) + tiny tail.
    n_bulk = (N // _ROWS_PER_FLAT) * _ROWS_PER_FLAT
    tail = N - n_bulk

    pieces = []
    if n_bulk > 0:
        M = (n_bulk * _F) // _LANES
        x_flat = x[:n_bulk].reshape(M, _LANES)   # contiguous row-major view
        # Pre-tile the weight once so the kernel never rebuilds the period-5
        # broadcast pattern per grid step.
        w_tiled = jnp.tile(weight.reshape(1, _F),
                           (1, _LANES // _F)).astype(dtype)
        out_flat = _flat_affine(x_flat, w_tiled, b_smem, compute_dtype,
                                block_rows, vmem_limit, donate_input)
        pieces.append(out_flat.reshape(n_bulk, _F))
    if tail > 0:
        pieces.append(_tail_affine(x[n_bulk:], weight, b_smem, compute_dtype))

    if len(pieces) == 1:
        return pieces[0]
    return jnp.concatenate(pieces, axis=0)


if __name__ == "__main__":
    key = jax.random.PRNGKey(0)
    kx, kw, kb, kx2 = jax.random.split(key, 4)

    weight = jax.random.normal(kw, (_F,), dtype=jnp.float32)
    bias = jax.random.normal(kb, (1,), dtype=jnp.float32)

    fwd = jax.jit(simple_model_forward)

    ok = True
    # Case 1: N a multiple of 128 -> pure lane-dense flat path, no tail.
    x1 = jax.random.normal(kx, (256, _F), dtype=jnp.float32)
    out1 = jax.block_until_ready(fwd(x1, weight, bias))
    ref1 = x1 * weight + bias
    ok &= out1.shape == ref1.shape and bool(
        jnp.allclose(out1, ref1, atol=1e-5, rtol=1e-5))

    # Case 2: small ragged N (< 128) -> tail-only path.
    x2 = jax.random.normal(kx2, (37, _F), dtype=jnp.float32)
    out2 = jax.block_until_ready(fwd(x2, weight, bias))
    ref2 = x2 * weight + bias
    ok &= out2.shape == ref2.shape and bool(
        jnp.allclose(out2, ref2, atol=1e-5, rtol=1e-5))

    # Case 3: ragged N with a bulk part -> bulk flat kernel + tail kernel.
    x3 = jax.random.normal(kx, (300, _F), dtype=jnp.float32)
    out3 = jax.block_until_ready(fwd(x3, weight, bias))
    ref3 = x3 * weight + bias
    ok &= out3.shape == ref3.shape and bool(
        jnp.allclose(out3, ref3, atol=1e-5, rtol=1e-5))

    assert ok, "mismatch vs reference"
    print("KERNEL_OK")
</pallas_src>

<mosaic_0001>
module attributes {stable_mosaic.version = 11 : i64} {
  func.func @kernel(%arg0: i32, %arg1: memref<2x640xf32, #tpu.memory_space<vmem>>, %arg2: memref<1x640xf32, #tpu.memory_space<vmem>>, %arg3: memref<1x1xf32, #tpu.memory_space<smem>>, %arg4: memref<2x640xf32, #tpu.memory_space<vmem>>) attributes {dimension_semantics = [#tpu.dimension_semantics<parallel>], iteration_bounds = array<i64: 1>, scalar_prefetch = 0 : i64, scratch_operands = 0 : i64, tpu.core_type = #tpu.core_type<tc>, window_params = [{transform_indices = @transform_0, window_bounds = array<i64: 2, 640>}, {pipeline_mode = #tpu.pipeline_mode<synchronous>, transform_indices = @transform_1, window_bounds = array<i64: 1, 640>}, {transform_indices = @transform_2, window_bounds = array<i64: 1, 1>}, {transform_indices = @transform_3, window_bounds = array<i64: 2, 640>}]} {
    %c0 = arith.constant 0 : index
    %c0_0 = arith.constant 0 : index
    %0 = vector.load %arg1[%c0, %c0_0] : memref<2x640xf32, #tpu.memory_space<vmem>>, vector<2x640xf32>
    %c0_1 = arith.constant 0 : index
    %c0_2 = arith.constant 0 : index
    %1 = vector.load %arg2[%c0_1, %c0_2] : memref<1x640xf32, #tpu.memory_space<vmem>>, vector<1x640xf32>
    %c0_3 = arith.constant 0 : index
    %c0_4 = arith.constant 0 : index
    %2 = memref.load %arg3[%c0_3, %c0_4] : memref<1x1xf32, #tpu.memory_space<smem>>
    %3 = vector.broadcast %1 : vector<1x640xf32> to vector<2x640xf32>
    %4 = arith.mulf %0, %3 : vector<2x640xf32>
    %5 = vector.broadcast %2 : f32 to vector<2x640xf32>
    %6 = arith.addf %4, %5 : vector<2x640xf32>
    %c0_5 = arith.constant 0 : index
    %c0_6 = arith.constant 0 : index
    %7 = vector.load %arg4[%c0_5, %c0_6] : memref<2x640xf32, #tpu.memory_space<vmem>>, vector<2x640xf32>
    tpu.vector_store %arg4[%c0_5, %c0_6], %6 {strides = array<i32>} : memref<2x640xf32, #tpu.memory_space<vmem>>, vector<2x640xf32>,
    return
  }
  func.func @transform_0(%arg0: i32) -> (i32, i32) {
    %c0_i32 = arith.constant 0 : i32
    %c0_i32_0 = arith.constant 0 : i32
    return %arg0, %c0_i32 : i32, i32
  }
  func.func @transform_1(%arg0: i32) -> (i32, i32) {
    %c0_i32 = arith.constant 0 : i32
    %c0_i32_0 = arith.constant 0 : i32
    %c0_i32_1 = arith.constant 0 : i32
    return %c0_i32, %c0_i32_0 : i32, i32
  }
  func.func @transform_2(%arg0: i32) -> (i32, i32) {
    %c0_i32 = arith.constant 0 : i32
    %c0_i32_0 = arith.constant 0 : i32
    %c0_i32_1 = arith.constant 0 : i32
    return %c0_i32, %c0_i32_0 : i32, i32
  }
  func.func @transform_3(%arg0: i32) -> (i32, i32) {
    %c0_i32 = arith.constant 0 : i32
    %c0_i32_0 = arith.constant 0 : i32
    return %arg0, %c0_i32 : i32, i32
  }
}

</mosaic_0001>

<bundles_post_ra>
// kernel: simple_model_forward.1
= control target key start
LH: loop header
LB: loop body
LE: loop exit
PB: predicated region body
PF: predicated region fallthrough
CT: control target
= control target key end

     0   :  { %v20_v0 = vlaneseq  ;;  %v78_v1 = vmov 1983009808   ;;  %s117_s1 = inlined_call_operand.vmem [shape: f32[1,640], index: 1, kind: input, shape index: {}]   ;;  %s118_s0 = inlined_call_operand.vmem [shape: f32[2,640], index: 0, kind: input, shape index: {}]   ;;  %s119_s2 = inlined_call_operand.<no memory space> [shape: f32[1,1], index: 2, kind: input, shape index: {}]   ;;  %s120_s3 = inlined_call_operand.vmem [shape: f32[2,640], index: 3, kind: output, shape index: {}]  }
   0x1   :  { %v43_v2 = vunpack.c.l.s4 %v78_v1  ;;  %v17_v4 = vld [vmem:[%s117_s1] sm:$0x1f]  ;;  %v16_v19 = vld [vmem:[%s118_s0 + $0x8] sm:$0x3]  ;;  %v68_v23 = vstv %s119_s2 }
   0x2   :  { %v21_v3 = vshrl.u32 %v20_v0, 7  ;;  %v15_v24 = vld [vmem:[%s118_s0] sm:$0xff] }
   0x3   :  { %v44_v5 = vunpack.c.0.s8 %v43_v2 }
   0x4   :  { %v22_v6 = vsub.s32 0, %v21_v3  ;;  %v26_v7 = vsub.s32 1, %v21_v3  ;;  %v30_v8 = vsub.s32 2, %v21_v3  ;;  %v34_v9 = vsub.s32 3, %v21_v3 }
   0x5   :  { %v47_v10 = vsub.s32 %v44_v5, %v21_v3  ;;  %v38_v11 = vsub.s32 4, %v21_v3 }
   0x6   :  { %v23_v12 = vrot.slane %v17_v4, %v22_v6  ;;  %v27_v13 = vrot.slane %v17_v4, %v26_v7  ;;  %v31_v14 = vrot.slane %v17_v4, %v30_v8  ;;  %v35_v15 = vrot.slane %v17_v4, %v34_v9 }
   0x7   :  { %v39_v16 = vrot.slane %v17_v4, %v38_v11 }
   0x8   :  { %v40_v17 = vcombine.low %v23_v12, %v27_v13  ;;  %v41_v18 = vcombine.low %v31_v14, %v35_v15 }
   0x9   :  { %v63_v20 = vrot.slane %v39_v16, %v47_v10 }
   0xa   :  { %v48_v21 = vrot.slane %v40_v17, %v47_v10  ;;  %v55_v22 = vrot.slane %v41_v18, %v47_v10 }
   0xb   :  { %v67_v25 = vmul.f32 %v63_v20, %v16_v19 }
   0xc   :  { %v56_v26 = vcombine.low %v48_v21, %v55_v22 }
   0xd   :  { %v70_v27 = vadd.f32 %v68_v23, %v67_v25 }
   0xe   :  { %v66_v28 = vmul.f32 %v56_v26, %v15_v24 }
   0xf   :  { %72 = vst [vmem:[%s120_s3 + $0x8] sm:$0x3] %v70_v27 }
  0x10   :  { %v69_v29 = vadd.f32 %v68_v23, %v66_v28 }
  0x12   :  { %71 = vst [vmem:[%s120_s3] sm:$0xff] %v69_v29 }

</bundles_post_ra>
